<compile_context>
chip_gen: v7x
topology: tpu7x:2x2x1
jax: 0.10.0
libtpu: 0.0.40
codegen_flags: <defaults>
</compile_context>

<pallas_src>
import jax
import jax.numpy as jnp
from jax.experimental import pallas as pl
from jax.experimental.pallas import tpu as pltpu


def _round_up(x, m):
    return ((x + m - 1) // m) * m


def _autoencoder_kernel(x_ref, w1_ref, b1_ref, w2_ref, b2_ref, out_ref):
    # x_ref:  [TB, D]  f32 activation tile (pipelined over the batch grid)
    # w1_ref: [D, Hp]  bf16 encoder weight (pre-transposed, zero-padded cols)
    # b1_ref: [1, Hp]  f32 encoder bias (zero-padded)
    # w2_ref: [Hp, D]  bf16 decoder weight (zero-padded rows)
    # b2_ref: [1, D]   f32 decoder bias
    # out_ref:[TB, D]  f32 reconstruction tile
    x = x_ref[...].astype(jnp.bfloat16)

    # Encoder: Linear + ReLU (bf16 MXU inputs, f32 accumulation).
    h = jnp.dot(x, w1_ref[...], preferred_element_type=jnp.float32)
    h = jnp.maximum(h + b1_ref[...], 0.0)

    # Decoder: Linear + Sigmoid. Elementwise epilogue rides the VPU/EUP slots.
    y = jnp.dot(h.astype(jnp.bfloat16), w2_ref[...],
                preferred_element_type=jnp.float32)
    y = y + b2_ref[...]
    out_ref[...] = jax.nn.sigmoid(y).astype(out_ref.dtype)


def autoencoder_forward(x_nchw, params, *, max_batch_tile=256):
    """Run the fused encoder->decoder Pallas kernel.

    x_nchw: [B, C, H, W] float32
    params: dict with w1 [D,Hp] bf16, b1 [1,Hp] f32, w2 [Hp,D] bf16, b2 [1,D] f32
            (Hp = hidden padded to a multiple of 128)
    returns [B, C, H, W] float32 reconstruction.
    """
    B, C, H, W = x_nchw.shape
    D = C * H * W
    w1, b1, w2, b2 = params["w1"], params["b1"], params["w2"], params["b2"]
    Hp = w1.shape[1]
    assert w1.shape == (D, Hp) and w2.shape == (Hp, D)
    assert b1.shape == (1, Hp) and b2.shape == (1, D)
    assert Hp % 128 == 0, "hidden dim must be padded to a multiple of 128 lanes"

    # Batch tile: multiple of 8 (f32 sublanes), capped at 256 rows. Pad the
    # batch so the grid divides evenly; padded rows are computed but sliced off
    # afterwards (rows are independent, so semantics are preserved).
    TB = min(max_batch_tile, _round_up(B, 8))
    B_pad = _round_up(B, TB)

    x_flat = x_nchw.reshape(B, D).astype(jnp.float32)  # row-major == nn.Flatten
    if B_pad != B:
        x_flat = jnp.pad(x_flat, ((0, B_pad - B), (0, 0)))

    grid = (B_pad // TB,)

    # Advisory cost estimate for XLA's scheduler around the custom call.
    cost = pl.CostEstimate(
        flops=4 * B_pad * D * Hp,                     # two matmuls (2*M*N*K each)
        transcendentals=B_pad * D,                    # sigmoid
        bytes_accessed=(x_flat.size * 4
                        + w1.size * w1.dtype.itemsize
                        + w2.size * w2.dtype.itemsize
                        + b1.size * 4 + b2.size * 4
                        + B_pad * D * 4),
    )

    # VMEM budget: resident weights + double-buffered x/out tiles + f32
    # intermediates, with 2x headroom; clamped to [32 MiB, 56 MiB] so it fits
    # the 64 MiB physical VMEM of v7x while overriding v5e's 16 MiB default.
    weight_bytes = (w1.size * w1.dtype.itemsize + w2.size * w2.dtype.itemsize
                    + b1.size * 4 + b2.size * 4)
    tile_bytes = 2 * 2 * TB * D * 4                   # x & out, double-buffered
    scratch_bytes = TB * Hp * 4 + TB * D * 4          # in-kernel intermediates
    vmem_limit = int(min(max(2 * (weight_bytes + tile_bytes + scratch_bytes),
                             32 << 20), 56 << 20))

    out_flat = pl.pallas_call(
        _autoencoder_kernel,
        out_shape=jax.ShapeDtypeStruct((B_pad, D), jnp.float32),
        grid=grid,
        in_specs=[
            pl.BlockSpec((TB, D), lambda i: (i, 0)),   # x tile (pipelined)
            pl.BlockSpec((D, Hp), lambda i: (0, 0)),   # w1 (VMEM-resident)
            pl.BlockSpec((1, Hp), lambda i: (0, 0)),   # b1 (VMEM-resident)
            pl.BlockSpec((Hp, D), lambda i: (0, 0)),   # w2 (VMEM-resident)
            pl.BlockSpec((1, D), lambda i: (0, 0)),    # b2 (VMEM-resident)
        ],
        out_specs=pl.BlockSpec((TB, D), lambda i: (i, 0)),
        compiler_params=pltpu.CompilerParams(
            dimension_semantics=("parallel",),         # megacore / v7x 2-TC split
            vmem_limit_bytes=vmem_limit),
        cost_estimate=cost,
    )(x_flat, w1, b1, w2, b2)

    return out_flat[:B].reshape(B, C, H, W)


def autoencoder_forward_ref(x_nchw, params):
    """Pure-JAX reference with identical bf16 operand / f32 accumulate math."""
    B, C, H, W = x_nchw.shape
    D = C * H * W
    x = x_nchw.reshape(B, D).astype(jnp.bfloat16)
    h = jnp.dot(x, params["w1"], preferred_element_type=jnp.float32)
    h = jnp.maximum(h + params["b1"], 0.0)
    y = jnp.dot(h.astype(jnp.bfloat16), params["w2"],
                preferred_element_type=jnp.float32)
    y = jax.nn.sigmoid(y + params["b2"])
    return y.reshape(B, C, H, W)


def init_params(key, d_in, hidden):
    """Deterministic parameter init (Kaiming-uniform-ish, like torch Linear).

    Weights are stored pre-transposed for x @ W, bf16, with the hidden dim
    zero-padded to a multiple of 128 (exactly preserves the hidden=`hidden`
    model: padded units have zero bias -> ReLU 0 -> zero decoder rows).
    """
    k1, k2, k3, k4 = jax.random.split(key, 4)
    bound1 = 1.0 / jnp.sqrt(d_in)
    bound2 = 1.0 / jnp.sqrt(hidden)
    hp = _round_up(hidden, 128)
    w1 = jax.random.uniform(k1, (d_in, hidden), jnp.float32, -bound1, bound1)
    b1 = jax.random.uniform(k2, (1, hidden), jnp.float32, -bound1, bound1)
    w2 = jax.random.uniform(k3, (hidden, d_in), jnp.float32, -bound2, bound2)
    b2 = jax.random.uniform(k4, (1, d_in), jnp.float32, -bound2, bound2)
    w1 = jnp.pad(w1, ((0, 0), (0, hp - hidden))).astype(jnp.bfloat16)
    b1 = jnp.pad(b1, ((0, 0), (0, hp - hidden)))                     # f32
    w2 = jnp.pad(w2, ((0, hp - hidden), (0, 0))).astype(jnp.bfloat16)
    return {"w1": w1, "b1": b1, "w2": w2, "b2": b2}


if __name__ == "__main__":
    key = jax.random.PRNGKey(0)
    k_x, k_p = jax.random.split(key)

    B, C, H, W = 2, 4, 16, 16          # small NCHW input
    HIDDEN = 32
    D = C * H * W                      # 1024

    x = jax.random.normal(k_x, (B, C, H, W), dtype=jnp.float32)
    params = init_params(k_p, D, HIDDEN)

    out = autoencoder_forward(x, params)
    jax.block_until_ready(out)

    # Sanity: shape preserved, sigmoid output range, finite values.
    assert out.shape == (B, C, H, W)
    assert bool(jnp.all(out >= 0.0)) and bool(jnp.all(out <= 1.0))
    assert bool(jnp.all(jnp.isfinite(out)))

    # Correctness vs. pure-JAX reference using the same bf16-operand math.
    ref = autoencoder_forward_ref(x, params)
    max_err = float(jnp.max(jnp.abs(out - ref)))
    assert max_err < 2e-2, f"mismatch vs reference: max_err={max_err}"

    print("KERNEL_OK")
</pallas_src>

<mosaic_0001>
module attributes {stable_mosaic.version = 11 : i64} {
  func.func @_autoencoder_kernel(%arg0: i32, %arg1: memref<8x1024xf32, #tpu.memory_space<vmem>>, %arg2: memref<1024x128xbf16, #tpu.memory_space<vmem>>, %arg3: memref<1x128xf32, #tpu.memory_space<vmem>>, %arg4: memref<128x1024xbf16, #tpu.memory_space<vmem>>, %arg5: memref<1x1024xf32, #tpu.memory_space<vmem>>, %arg6: memref<8x1024xf32, #tpu.memory_space<vmem>>) attributes {dimension_semantics = [#tpu.dimension_semantics<parallel>], iteration_bounds = array<i64: 1>, scalar_prefetch = 0 : i64, scratch_operands = 0 : i64, tpu.core_type = #tpu.core_type<tc>, window_params = [{transform_indices = @transform_0, window_bounds = array<i64: 8, 1024>}, {pipeline_mode = #tpu.pipeline_mode<synchronous>, transform_indices = @transform_1, window_bounds = array<i64: 1024, 128>}, {pipeline_mode = #tpu.pipeline_mode<synchronous>, transform_indices = @transform_2, window_bounds = array<i64: 1, 128>}, {pipeline_mode = #tpu.pipeline_mode<synchronous>, transform_indices = @transform_3, window_bounds = array<i64: 128, 1024>}, {pipeline_mode = #tpu.pipeline_mode<synchronous>, transform_indices = @transform_4, window_bounds = array<i64: 1, 1024>}, {transform_indices = @transform_5, window_bounds = array<i64: 8, 1024>}]} {
    %c0 = arith.constant 0 : index
    %c0_0 = arith.constant 0 : index
    %0 = vector.load %arg1[%c0, %c0_0] : memref<8x1024xf32, #tpu.memory_space<vmem>>, vector<8x1024xf32>
    %1 = arith.truncf %0 : vector<8x1024xf32> to vector<8x1024xbf16>
    %c0_1 = arith.constant 0 : index
    %c0_2 = arith.constant 0 : index
    %2 = vector.load %arg2[%c0_1, %c0_2] : memref<1024x128xbf16, #tpu.memory_space<vmem>>, vector<1024x128xbf16>
    %cst = arith.constant dense<0.000000e+00> : vector<8x128xf32>
    %3 = tpu.matmul %1, %2, %cst {dimension_numbers = #tpu.dot_dimension_numbers<[1], [0], [0], [1], [0, 0, 1, 1], [], []>} : vector<8x1024xbf16>, vector<1024x128xbf16>, vector<8x128xf32> -> vector<8x128xf32>
    %c0_3 = arith.constant 0 : index
    %c0_4 = arith.constant 0 : index
    %4 = vector.load %arg3[%c0_3, %c0_4] : memref<1x128xf32, #tpu.memory_space<vmem>>, vector<1x128xf32>
    %5 = vector.broadcast %4 : vector<1x128xf32> to vector<8x128xf32>
    %6 = arith.addf %3, %5 : vector<8x128xf32>
    %cst_5 = arith.constant 0.000000e+00 : f32
    %7 = vector.broadcast %cst_5 : f32 to vector<8x128xf32>
    %8 = arith.maximumf %6, %7 : vector<8x128xf32>
    %9 = arith.truncf %8 : vector<8x128xf32> to vector<8x128xbf16>
    %c0_6 = arith.constant 0 : index
    %c0_7 = arith.constant 0 : index
    %10 = vector.load %arg4[%c0_6, %c0_7] : memref<128x1024xbf16, #tpu.memory_space<vmem>>, vector<128x1024xbf16>
    %cst_8 = arith.constant dense<0.000000e+00> : vector<8x1024xf32>
    %11 = tpu.matmul %9, %10, %cst_8 {dimension_numbers = #tpu.dot_dimension_numbers<[1], [0], [0], [1], [0, 0, 1, 1], [], []>} : vector<8x128xbf16>, vector<128x1024xbf16>, vector<8x1024xf32> -> vector<8x1024xf32>
    %c0_9 = arith.constant 0 : index
    %c0_10 = arith.constant 0 : index
    %12 = vector.load %arg5[%c0_9, %c0_10] : memref<1x1024xf32, #tpu.memory_space<vmem>>, vector<1x1024xf32>
    %13 = vector.broadcast %12 : vector<1x1024xf32> to vector<8x1024xf32>
    %14 = arith.addf %11, %13 : vector<8x1024xf32>
    %15 = arith.negf %14 : vector<8x1024xf32>
    %16 = math.exp %15 : vector<8x1024xf32>
    %cst_11 = arith.constant 1.000000e+00 : f32
    %17 = vector.broadcast %cst_11 : f32 to vector<8x1024xf32>
    %18 = arith.addf %17, %16 : vector<8x1024xf32>
    %19 = arith.divf %17, %18 : vector<8x1024xf32>
    %c0_12 = arith.constant 0 : index
    %c0_13 = arith.constant 0 : index
    %20 = vector.load %arg6[%c0_12, %c0_13] : memref<8x1024xf32, #tpu.memory_space<vmem>>, vector<8x1024xf32>
    tpu.vector_store %arg6[%c0_12, %c0_13], %19 {strides = array<i32>} : memref<8x1024xf32, #tpu.memory_space<vmem>>, vector<8x1024xf32>,
    return
  }
  func.func @transform_0(%arg0: i32) -> (i32, i32) {
    %c0_i32 = arith.constant 0 : i32
    %c0_i32_0 = arith.constant 0 : i32
    return %arg0, %c0_i32 : i32, i32
  }
  func.func @transform_1(%arg0: i32) -> (i32, i32) {
    %c0_i32 = arith.constant 0 : i32
    %c0_i32_0 = arith.constant 0 : i32
    %c0_i32_1 = arith.constant 0 : i32
    return %c0_i32, %c0_i32_0 : i32, i32
  }
  func.func @transform_2(%arg0: i32) -> (i32, i32) {
    %c0_i32 = arith.constant 0 : i32
    %c0_i32_0 = arith.constant 0 : i32
    %c0_i32_1 = arith.constant 0 : i32
    return %c0_i32, %c0_i32_0 : i32, i32
  }
  func.func @transform_3(%arg0: i32) -> (i32, i32) {
    %c0_i32 = arith.constant 0 : i32
    %c0_i32_0 = arith.constant 0 : i32
    %c0_i32_1 = arith.constant 0 : i32
    return %c0_i32, %c0_i32_0 : i32, i32
  }
  func.func @transform_4(%arg0: i32) -> (i32, i32) {
    %c0_i32 = arith.constant 0 : i32
    %c0_i32_0 = arith.constant 0 : i32
    %c0_i32_1 = arith.constant 0 : i32
    return %c0_i32, %c0_i32_0 : i32, i32
  }
  func.func @transform_5(%arg0: i32) -> (i32, i32) {
    %c0_i32 = arith.constant 0 : i32
    %c0_i32_0 = arith.constant 0 : i32
    return %arg0, %c0_i32 : i32, i32
  }
}

</mosaic_0001>

<bundles_post_ra>
// kernel: tpu_custom_call.1
= control target key start
LH: loop header
LB: loop body
LE: loop exit
PB: predicated region body
PF: predicated region fallthrough
CT: control target
= control target key end

     0   :  { %10 = vsyncpa [#allocation3], 0  ;;  %s1943_s0 = inlined_call_operand.hbm [shape: f32[8,1024], index: 0, kind: input, shape index: {}]   ;;  %s1944_s1 = inlined_call_operand.hbm [shape: bf16[1024,128], index: 1, kind: input, shape index: {}]   ;;  %s1945_s2 = inlined_call_operand.vmem [shape: f32[1,128], index: 2, kind: input, shape index: {}]   ;;  %s1946_s3 = inlined_call_operand.hbm [shape: bf16[128,1024], index: 3, kind: input, shape index: {}]   ;;  %s1947_s4 = inlined_call_operand.vmem [shape: f32[1,1024], index: 4, kind: input, shape index: {}]   ;;  %s1948_s5 = inlined_call_operand.hbm [shape: f32[8,1024], index: 5, kind: output, shape index: {}]  }
   0x1   :  { %11 = vsyncpa [#allocation6], 0 }
   0x2   :  { %12 = vsyncpa [#allocation4], 0  ;;  %s1844_s18 = smov [#allocation5]   ;;  %s1750_s22 = scalar_lea.hbm %s1944_s1, 8192 }
   0x3   :  { %s28_s19 = sshll.u32 %s1844_s18, 4  ;;  %p1751_p0 = scmp.ne.s32.totalorder %s1944_s1, %s1750_s22  ;;  %s29_s19 = int_to_ptr.vmem [resolvable:$true] %s28_s19 }
   0x4   :  { %p1754_p1 = scmp.lt.u32.totalorder %s1750_s22, %s1944_s1 }
   0x6   :  { %p1756_p2 = pnand %p1754_p1, %p1751_p0 }
   0x8   :  { %1759 = shalt.err (!%p1756_p2)
}
   0x9   :  { %s1760_s27 = scalar_lea.vmem %s29_s19, 8192  ;;  %p1765_p4 = scmp.lt.s32.totalorder %s29_s19, %s29_s19 }
   0xa   :  { %p1761_p3 = scmp.ne.s32.totalorder %s29_s19, %s1760_s27  ;;  %p1766_p5 = scmp.lt.s32.totalorder %s1760_s27, %s1760_s27 }
   0xc   :  { %p1767_p6 = por %p1766_p5, %p1765_p4 }
   0xe   :  { %p1768_p7 = pnand %p1767_p6, %p1761_p3 }
  0x10   :  { %1771 = shalt.err (!%p1768_p7)
}
  0x11   :  { %s1845_s28 = smov 64   ;;  %s1846_s29 = smov 4  }
  0x12   :  { %34 = dma.hbm_to_vmem [thread:$0]  %s1944_s1, 8192, %s29_s19, [#allocation6], %s1845_s28, %s1845_s28, %s1846_s29  }
  0x13   :  { %s1847_s7 = smov [#allocation2]   ;;  %s1848_s9 = smov [#allocation7]  }
  0x14   :  { %s19_s8 = sshll.u32 %s1847_s7, 4  ;;  %s42_s10 = sshll.u32 %s1848_s9, 4  ;;  %s20_s8 = int_to_ptr.vmem [resolvable:$true] %s19_s8  ;;  %s43_s10 = int_to_ptr.vmem [resolvable:$true] %s42_s10 }
  0x15   :  { %s1772_s13 = scalar_lea.hbm %s1943_s0, 1024 }
  0x16   :  { %p1773_p8 = scmp.ne.s32.totalorder %s1943_s0, %s1772_s13  ;;  %p1776_p9 = scmp.lt.u32.totalorder %s1772_s13, %s1943_s0 }
  0x18   :  { %p1778_p10 = pnand %p1776_p9, %p1773_p8 }
  0x1a   :  { %1781 = shalt.err (!%p1778_p10)
}
  0x1b   :  { %s1782_s1 = scalar_lea.vmem %s20_s8, 1024  ;;  %p1787_p12 = scmp.lt.s32.totalorder %s20_s8, %s20_s8 }
  0x1c   :  { %p1783_p11 = scmp.ne.s32.totalorder %s20_s8, %s1782_s1  ;;  %p1788_p13 = scmp.lt.s32.totalorder %s1782_s1, %s1782_s1 }
  0x1e   :  { %p1789_p0 = por %p1788_p13, %p1787_p12 }
  0x20   :  { %p1790_p1 = pnand %p1789_p0, %p1783_p11 }
  0x22   :  { %1793 = shalt.err (!%p1790_p1)
}
  0x23   :  { %22 = dma.hbm_to_vmem [thread:$0]  %s1943_s0, 1024, %s20_s8, [#allocation3]  }
  0x24   :  { %s1794_s22 = scalar_lea.hbm %s1946_s3, 8192 }
  0x25   :  { %p1795_p2 = scmp.ne.s32.totalorder %s1946_s3, %s1794_s22  ;;  %p1798_p3 = scmp.lt.u32.totalorder %s1794_s22, %s1946_s3 }
  0x27   :  { %p1800_p4 = pnand %p1798_p3, %p1795_p2 }
  0x29   :  { %1803 = shalt.err (!%p1800_p4)
}
  0x2a   :  { %s1804_s27 = scalar_lea.vmem %s43_s10, 8192  ;;  %p1809_p6 = scmp.lt.s32.totalorder %s43_s10, %s43_s10 }
  0x2b   :  { %p1805_p5 = scmp.ne.s32.totalorder %s43_s10, %s1804_s27  ;;  %p1810_p7 = scmp.lt.s32.totalorder %s1804_s27, %s1804_s27 }
  0x2d   :  { %p1811_p8 = por %p1810_p7, %p1809_p6 }
  0x2f   :  { %p1812_p9 = pnand %p1811_p8, %p1805_p5 }
  0x31   :  { %1815 = shalt.err (!%p1812_p9)
}
  0x32   :  { %s1849_s0 = smov 512   ;;  %s1850_s28 = smov 32  }
  0x33   :  { %48 = dma.hbm_to_vmem [thread:$0]  %s1946_s3, 8192, %s43_s10, [#allocation6], %s1849_s0, %s1849_s0, %s1850_s28  }
  0x34   :  { %1838 = dma.done.wait [#allocation3], 1024  }
  0x35   :  { %1839 = vsyncadd [#allocation3], 4294966272 }
  0x36   :  { %1840 = dma.done.wait [#allocation6], 16384  }
  0x37   :  { %1841 = vsyncadd [#allocation6], 4294950912  ;;  %v1654_v0 = vld [vmem:[#allocation5 + $0x40] sm:$0xff]   ;;  %v1658_v4 = vld [vmem:[#allocation5 + $0x48] sm:$0xff]  }
  0x38   :  { %v1655_v1 = vld [vmem:[#allocation5 + $0xc0] sm:$0xff]   ;;  %1557 = vmatprep.subr.bf16.mxu0 %v1654_v0  ;;  %v1659_v5 = vld [vmem:[#allocation5 + $0xc8] sm:$0xff]   ;;  %v1662_v8 = vld [vmem:[#allocation5 + $0x50] sm:$0xff]  }
  0x39   :  { %v1656_v2 = vld [vmem:[#allocation5] sm:$0xff]   ;;  %1579 = vmatprep.subr.bf16.mxu1 %v1655_v1  ;;  %v1660_v6 = vld [vmem:[#allocation5 + $0x8] sm:$0xff]   ;;  %v1663_v9 = vld [vmem:[#allocation5 + $0xd0] sm:$0xff]  }
  0x3a   :  { %v1657_v3 = vld [vmem:[#allocation5 + $0x80] sm:$0xff]   ;;  %1558 = vmatpush3.bf16.msra.mxu0 %v1656_v2  ;;  %v1661_v7 = vld [vmem:[#allocation5 + $0x88] sm:$0xff]   ;;  %v1664_v10 = vld [vmem:[#allocation5 + $0x10] sm:$0xff]  }
  0x3b   :  { %1580 = vmatpush3.bf16.msra.mxu1 %v1657_v3  ;;  %1559 = vmatprep.subr.bf16.mxu0 %v1658_v4  ;;  %v1665_v11 = vld [vmem:[#allocation5 + $0x90] sm:$0xff]   ;;  %v1666_v12 = vld [vmem:[#allocation5 + $0x58] sm:$0xff]   ;;  %v1670_v16 = vld [vmem:[#allocation5 + $0x60] sm:$0xff]  }
  0x3c   :  { %1581 = vmatprep.subr.bf16.mxu1 %v1659_v5  ;;  %v1667_v13 = vld [vmem:[#allocation5 + $0xd8] sm:$0xff]   ;;  %v1671_v17 = vld [vmem:[#allocation5 + $0xe0] sm:$0xff]   ;;  %v1674_v20 = vld [vmem:[#allocation5 + $0x68] sm:$0xff]  }
  0x3d   :  { %v1668_v14 = vld [vmem:[#allocation5 + $0x18] sm:$0xff]   ;;  %v1672_v18 = vld [vmem:[#allocation5 + $0x20] sm:$0xff]   ;;  %v1675_v21 = vld [vmem:[#allocation5 + $0xe8] sm:$0xff]  }
  0x3e   :  { %1560 = vmatpush3.bf16.msra.mxu0 %v1660_v6  ;;  %v1669_v15 = vld [vmem:[#allocation5 + $0x98] sm:$0xff]   ;;  %v1673_v19 = vld [vmem:[#allocation5 + $0xa0] sm:$0xff]   ;;  %v1676_v22 = vld [vmem:[#allocation5 + $0x28] sm:$0xff]  }
  0x3f   :  { %1582 = vmatpush3.bf16.msra.mxu1 %v1661_v7  ;;  %1561 = vmatprep.subr.bf16.mxu0 %v1662_v8  ;;  %v1677_v23 = vld [vmem:[#allocation5 + $0xa8] sm:$0xff]   ;;  %v1678_v24 = vld [vmem:[#allocation5 + $0x70] sm:$0xff]   ;;  %v1682_v28 = vld [vmem:[#allocation5 + $0x78] sm:$0xff]  }
  0x40   :  { %1583 = vmatprep.subr.bf16.mxu1 %v1663_v9  ;;  %v1679_v25 = vld [vmem:[#allocation5 + $0xf0] sm:$0xff]   ;;  %v1683_v29 = vld [vmem:[#allocation5 + $0xf8] sm:$0xff]   ;;  %v62_v32 = vld [vmem:[#allocation2 + $0x8] sm:$0xff] }
  0x41   :  { %v1680_v26 = vld [vmem:[#allocation5 + $0x30] sm:$0xff]   ;;  %v1684_v30 = vld [vmem:[#allocation5 + $0x38] sm:$0xff]   ;;  %v61_v34 = vld [vmem:[#allocation2] sm:$0xff]  ;;  %v70_v35 = vpack.c.bf16 %v62_v32, %v62_v32 }
  0x42   :  { %1562 = vmatpush3.bf16.msra.mxu0 %v1664_v10  ;;  %v1681_v27 = vld [vmem:[#allocation5 + $0xb0] sm:$0xff]   ;;  %v1685_v31 = vld [vmem:[#allocation5 + $0xb8] sm:$0xff]   ;;  %v69_v37 = vpack.c.bf16 %v61_v34, %v61_v34  ;;  %v1686_v40 = vld [vmem:[#allocation5 + $0x140] sm:$0xff]  }
  0x43   :  { %1584 = vmatpush3.bf16.msra.mxu1 %v1665_v11  ;;  %1563 = vmatprep.subr.bf16.mxu0 %v1666_v12  ;;  %v64_v33 = vld [vmem:[#allocation2 + $0x18] sm:$0xff]  ;;  %v63_v38 = vld [vmem:[#allocation2 + $0x10] sm:$0xff]  ;;  %v1687_v41 = vld [vmem:[#allocation5 + $0x1c0] sm:$0xff]  }
  0x44   :  { %1585 = vmatprep.subr.bf16.mxu1 %v1667_v13  ;;  %v72_v36 = vpack.c.bf16 %v64_v33, %v64_v33  ;;  %v71_v39 = vpack.c.bf16 %v63_v38, %v63_v38  ;;  %628 = vmatprep.mubr.bf16.mxu0 %v70_v35  ;;  %v1688_v42 = vld [vmem:[#allocation5 + $0x100] sm:$0xff]   ;;  %v1690_v44 = vld [vmem:[#allocation5 + $0x148] sm:$0xff]   ;;  %v1694_v48 = vld [vmem:[#allocation5 + $0x150] sm:$0xff]  }
  0x45   :  { %v1689_v43 = vld [vmem:[#allocation5 + $0x180] sm:$0xff]   ;;  %v1691_v45 = vld [vmem:[#allocation5 + $0x1c8] sm:$0xff]   ;;  %v1695_v49 = vld [vmem:[#allocation5 + $0x1d0] sm:$0xff]  }
  0x46   :  { %1564 = vmatpush3.bf16.msra.mxu0 %v1668_v14  ;;  %668 = vmatprep.mubr.bf16.mxu1 %v72_v36  ;;  %v1692_v46 = vld [vmem:[#allocation5 + $0x108] sm:$0xff]   ;;  %v1696_v50 = vld [vmem:[#allocation5 + $0x110] sm:$0xff]   ;;  %v1698_v52 = vld [vmem:[#allocation5 + $0x158] sm:$0xff]  }
  0x47   :  { %1586 = vmatpush3.bf16.msra.mxu1 %v1669_v15  ;;  %1565 = vmatprep.subr.bf16.mxu0 %v1670_v16  ;;  %v1693_v47 = vld [vmem:[#allocation5 + $0x188] sm:$0xff]   ;;  %v1697_v51 = vld [vmem:[#allocation5 + $0x190] sm:$0xff]   ;;  %v1699_v53 = vld [vmem:[#allocation5 + $0x1d8] sm:$0xff]  }
  0x48   :  { %1587 = vmatprep.subr.bf16.mxu1 %v1671_v17  ;;  %v1700_v54 = vld [vmem:[#allocation5 + $0x118] sm:$0xff]   ;;  %v1702_v56 = vld [vmem:[#allocation5 + $0x160] sm:$0xff]   ;;  %v1706_v60 = vld [vmem:[#allocation5 + $0x168] sm:$0xff]  }
  0x49   :  { %v1701_v55 = vld [vmem:[#allocation5 + $0x198] sm:$0xff]   ;;  %v1703_v57 = vld [vmem:[#allocation5 + $0x1e0] sm:$0xff]   ;;  %v1707_v61 = vld [vmem:[#allocation5 + $0x1e8] sm:$0xff]  }
  0x4a   :  { %1566 = vmatpush3.bf16.msra.mxu0 %v1672_v18  ;;  %v1704_v58 = vld [vmem:[#allocation5 + $0x120] sm:$0xff]   ;;  %v1708_v62 = vld [vmem:[#allocation5 + $0x128] sm:$0xff]   ;;  %v1710_v0 = vld [vmem:[#allocation5 + $0x170] sm:$0xff]  }
  0x4b   :  { %1588 = vmatpush3.bf16.msra.mxu1 %v1673_v19  ;;  %1567 = vmatprep.subr.bf16.mxu0 %v1674_v20  ;;  %v1705_v59 = vld [vmem:[#allocation5 + $0x1a0] sm:$0xff]   ;;  %v1709_v63 = vld [vmem:[#allocation5 + $0x1a8] sm:$0xff]   ;;  %v1711_v1 = vld [vmem:[#allocation5 + $0x1f0] sm:$0xff]  }
  0x4c   :  { %1589 = vmatprep.subr.bf16.mxu1 %v1675_v21  ;;  %v1712_v2 = vld [vmem:[#allocation5 + $0x130] sm:$0xff]   ;;  %v1714_v4 = vld [vmem:[#allocation5 + $0x178] sm:$0xff]   ;;  %v66_v8 = vld [vmem:[#allocation2 + $0x28] sm:$0xff] }
  0x4d   :  { %v1713_v3 = vld [vmem:[#allocation5 + $0x1b0] sm:$0xff]   ;;  %v1715_v5 = vld [vmem:[#allocation5 + $0x1f8] sm:$0xff]   ;;  %v74_v10 = vpack.c.bf16 %v66_v8, %v66_v8  ;;  %v65_v12 = vld [vmem:[#allocation2 + $0x20] sm:$0xff] }
  0x4e   :  { %1568 = vmatpush3.bf16.msra.mxu0 %v1676_v22  ;;  %v1716_v6 = vld [vmem:[#allocation5 + $0x138] sm:$0xff]   ;;  %v67_v13 = vld [vmem:[#allocation2 + $0x30] sm:$0xff]  ;;  %v73_v14 = vpack.c.bf16 %v65_v12, %v65_v12  ;;  %v758_v16 = vld [vmem:[#allocation7] sm:$0xff] }
  0x4f   :  { %1590 = vmatpush3.bf16.msra.mxu1 %v1677_v23  ;;  %1569 = vmatprep.subr.bf16.mxu0 %v1678_v24  ;;  %v1717_v7 = vld [vmem:[#allocation5 + $0x1b8] sm:$0xff]   ;;  %v75_v15 = vpack.c.bf16 %v67_v13, %v67_v13  ;;  %v762_v17 = vld [vmem:[#allocation7 + $0x20] sm:$0xff]  ;;  %v759_v18 = vld [vmem:[#allocation7 + $0x8] sm:$0xff] }
  0x50   :  { %1591 = vmatprep.subr.bf16.mxu1 %v1679_v25  ;;  %v68_v9 = vld [vmem:[#allocation2 + $0x38] sm:$0xff]  ;;  %v1485_v19 = vcombine.low %v758_v16, %v762_v17  ;;  %v1486_v20 = vcombine.high %v758_v16, %v762_v17  ;;  %v763_v21 = vld [vmem:[#allocation7 + $0x28] sm:$0xff]  ;;  %v766_v22 = vld [vmem:[#allocation7 + $0x40] sm:$0xff] }
  0x51   :  { %v76_v11 = vpack.c.bf16 %v68_v9, %v68_v9  ;;  %v770_v23 = vld [vmem:[#allocation7 + $0x60] sm:$0xff]  ;;  %v1487_v24 = vcombine.low %v759_v18, %v763_v21  ;;  %v1488_v25 = vcombine.high %v759_v18, %v763_v21  ;;  %v775_v32 = vld [vmem:[#allocation7 + $0x88] sm:$0xff]  ;;  %v760_v16 = vld [vmem:[#allocation7 + $0x10] sm:$0xff] }
  0x52   :  { %1570 = vmatpush3.bf16.msra.mxu0 %v1680_v26  ;;  %v1494_v26 = vcombine.high %v766_v22, %v770_v23  ;;  %v779_v33 = vld [vmem:[#allocation7 + $0xa8] sm:$0xff]  ;;  %v1493_v34 = vcombine.low %v766_v22, %v770_v23  ;;  %v782_v38 = vld [vmem:[#allocation7 + $0xc0] sm:$0xff]  ;;  %v764_v17 = vld [vmem:[#allocation7 + $0x30] sm:$0xff]  ;;  %v1851_v22 = vmov 0  }
  0x53   :  { %1592 = vmatpush3.bf16.msra.mxu1 %v1681_v27  ;;  %1571 = vmatprep.subr.bf16.mxu0 %v1682_v28  ;;  %v767_v27 = vld [vmem:[#allocation7 + $0x48] sm:$0xff]  ;;  %v814_v8 = vld [vmem:[#allocation7 + $0x1c0] sm:$0xff]  ;;  %v761_v18 = vld [vmem:[#allocation7 + $0x18] sm:$0xff] }
  0x54   :  { %1593 = vmatprep.subr.bf16.mxu1 %v1683_v29  ;;  %v771_v28 = vld [vmem:[#allocation7 + $0x68] sm:$0xff]  ;;  %v774_v29 = vld [vmem:[#allocation7 + $0x80] sm:$0xff]  ;;  %v765_v21 = vld [vmem:[#allocation7 + $0x38] sm:$0xff] }
  0x55   :  { %v1495_v35 = vcombine.low %v767_v27, %v771_v28  ;;  %v818_v9 = vld [vmem:[#allocation7 + $0x1e0] sm:$0xff]  ;;  %v819_v12 = vld [vmem:[#allocation7 + $0x1e8] sm:$0xff]  ;;  %v1491_v23 = vcombine.low %v761_v18, %v765_v21 }
  0x56   :  { %1572 = vmatpush3.bf16.msra.mxu0 %v1684_v30  ;;  %v1496_v30 = vcombine.high %v767_v27, %v771_v28  ;;  %v1541_v13 = vcombine.low %v814_v8, %v818_v9  ;;  %v1420_v27 = vld [vmem:[%s1945_s2] ss:$0 sm:$0xff] }
  0x57   :  { %1594 = vmatpush3.bf16.msra.mxu1 %v1685_v31  ;;  %1601 = vmatprep.subr.bf16.mxu0 %v1686_v40  ;;  %v778_v31 = vld [vmem:[#allocation7 + $0xa0] sm:$0xff]  ;;  %v783_v40 = vld [vmem:[#allocation7 + $0xc8] sm:$0xff] }
  0x58   :  { %1623 = vmatprep.subr.bf16.mxu1 %v1687_v41  ;;  %v1502_v36 = vcombine.high %v774_v29, %v778_v31  ;;  %v787_v41 = vld [vmem:[#allocation7 + $0xe8] sm:$0xff] }
  0x59   :  { %629 = vmatmul.mubr.bf16.vlgmr.msra.gmra.mrb[0].mxu0 %v69_v37  ;;  %v1504_v37 = vcombine.high %v775_v32, %v779_v33 }
  0x5a   :  { %669 = vmatmul.mubr.bf16.vlgmr.msra.gmra.mrb[0].mxu1 %v71_v39  ;;  %1602 = vmatpush3.bf16.msra.mxu0 %v1688_v42  ;;  %v786_v39 = vld [vmem:[#allocation7 + $0xe0] sm:$0xff]  ;;  %v1501_v42 = vcombine.low %v774_v29, %v778_v31 }
  0x5b   :  { %1624 = vmatpush3.bf16.msra.mxu1 %v1689_v43  ;;  %1603 = vmatprep.subr.bf16.mxu0 %v1690_v44  ;;  %v1503_v43 = vcombine.low %v775_v32, %v779_v33  ;;  %v1510_v44 = vcombine.high %v782_v38, %v786_v39 }
  0x5c   :  { %1625 = vmatprep.subr.bf16.mxu1 %v1691_v45  ;;  %708 = vmatprep.mubr.bf16.mxu0 %v74_v10  ;;  %v1512_v45 = vcombine.high %v783_v40, %v787_v41  ;;  %v815_v10 = vld [vmem:[#allocation7 + $0x1c8] sm:$0xff] }
  0x5d   :  { %748 = vmatprep.mubr.bf16.mxu1 %v76_v11  ;;  %v1542_v11 = vcombine.high %v814_v8, %v818_v9 }
  0x5e   :  { %1604 = vmatpush3.bf16.msra.mxu0 %v1692_v46  ;;  %v790_v46 = vld [vmem:[#allocation7 + $0x100] sm:$0xff] }
  0x5f   :  { %1626 = vmatpush3.bf16.msra.mxu1 %v1693_v47  ;;  %1605 = vmatprep.subr.bf16.mxu0 %v1694_v48  ;;  %v794_v47 = vld [vmem:[#allocation7 + $0x120] sm:$0xff]  ;;  %v791_v48 = vld [vmem:[#allocation7 + $0x108] sm:$0xff] }
  0x60   :  { %1627 = vmatprep.subr.bf16.mxu1 %v1695_v49  ;;  %v795_v49 = vld [vmem:[#allocation7 + $0x128] sm:$0xff] }
  0x62   :  { %1606 = vmatpush3.bf16.msra.mxu0 %v1696_v50  ;;  %v1509_v50 = vcombine.low %v782_v38, %v786_v39 }
  0x63   :  { %1628 = vmatpush3.bf16.msra.mxu1 %v1697_v51  ;;  %1607 = vmatprep.subr.bf16.mxu0 %v1698_v52  ;;  %v1511_v51 = vcombine.low %v783_v40, %v787_v41  ;;  %v1518_v52 = vcombine.high %v790_v46, %v794_v47 }
  0x64   :  { %1629 = vmatprep.subr.bf16.mxu1 %v1699_v53  ;;  %v1520_v53 = vcombine.high %v791_v48, %v795_v49 }
  0x66   :  { %1608 = vmatpush3.bf16.msra.mxu0 %v1700_v54  ;;  %v798_v54 = vld [vmem:[#allocation7 + $0x140] sm:$0xff] }
  0x67   :  { %1630 = vmatpush3.bf16.msra.mxu1 %v1701_v55  ;;  %1609 = vmatprep.subr.bf16.mxu0 %v1702_v56  ;;  %v802_v55 = vld [vmem:[#allocation7 + $0x160] sm:$0xff]  ;;  %v799_v56 = vld [vmem:[#allocation7 + $0x148] sm:$0xff] }
  0x68   :  { %1631 = vmatprep.subr.bf16.mxu1 %v1703_v57  ;;  %v803_v57 = vld [vmem:[#allocation7 + $0x168] sm:$0xff] }
  0x6a   :  { %1610 = vmatpush3.bf16.msra.mxu0 %v1704_v58  ;;  %v1517_v58 = vcombine.low %v790_v46, %v794_v47 }
  0x6b   :  { %1632 = vmatpush3.bf16.msra.mxu1 %v1705_v59  ;;  %1611 = vmatprep.subr.bf16.mxu0 %v1706_v60  ;;  %v1519_v59 = vcombine.low %v791_v48, %v795_v49  ;;  %v1526_v60 = vcombine.high %v798_v54, %v802_v55 }
  0x6c   :  { %1633 = vmatprep.subr.bf16.mxu1 %v1707_v61  ;;  %v1528_v61 = vcombine.high %v799_v56, %v803_v57 }
  0x6e   :  { %1612 = vmatpush3.bf16.msra.mxu0 %v1708_v62  ;;  %v1525_v62 = vcombine.low %v798_v54, %v802_v55 }
  0x6f   :  { %1634 = vmatpush3.bf16.msra.mxu1 %v1709_v63  ;;  %1613 = vmatprep.subr.bf16.mxu0 %v1710_v0  ;;  %v1527_v63 = vcombine.low %v799_v56, %v803_v57  ;;  %v806_v0 = vld [vmem:[#allocation7 + $0x180] sm:$0xff] }
  0x70   :  { %1635 = vmatprep.subr.bf16.mxu1 %v1711_v1  ;;  %v810_v1 = vld [vmem:[#allocation7 + $0x1a0] sm:$0xff] }
  0x72   :  { %1614 = vmatpush3.bf16.msra.mxu0 %v1712_v2  ;;  %v807_v2 = vld [vmem:[#allocation7 + $0x188] sm:$0xff] }
  0x73   :  { %1636 = vmatpush3.bf16.msra.mxu1 %v1713_v3  ;;  %1615 = vmatprep.subr.bf16.mxu0 %v1714_v4  ;;  %v1534_v3 = vcombine.high %v806_v0, %v810_v1  ;;  %v811_v4 = vld [vmem:[#allocation7 + $0x1a8] sm:$0xff] }
  0x74   :  { %1637 = vmatprep.subr.bf16.mxu1 %v1715_v5  ;;  %v1533_v5 = vcombine.low %v806_v0, %v810_v1 }
  0x76   :  { %1616 = vmatpush3.bf16.msra.mxu0 %v1716_v6  ;;  %v1535_v6 = vcombine.low %v807_v2, %v811_v4 }
  0x77   :  { %1638 = vmatpush3.bf16.msra.mxu1 %v1717_v7  ;;  %1184 = vmatprep.subr.bf16.mxu0 %v1486_v20  ;;  %v1536_v7 = vcombine.high %v807_v2, %v811_v4  ;;  %v1490_v20 = vcombine.high %v760_v16, %v764_v17  ;;  %v784_v2 = vld [vmem:[#allocation7 + $0xd0] sm:$0xff]  ;;  %v785_v4 = vld [vmem:[#allocation7 + $0xd8] sm:$0xff] }
  0x78   :  { %1225 = vmatprep.subr.bf16.mxu1 %v1488_v25 }
  0x79   :  { %709 = vmatmul.mubr.bf16.vlgmr.msra.gmra.mrb[4].mxu0 %v73_v14  ;;  %v1543_v14 = vcombine.low %v815_v10, %v819_v12 }
  0x7a   :  { %749 = vmatmul.mubr.bf16.vlgmr.msra.gmra.mrb[4].mxu1 %v75_v15  ;;  %1185 = vmatpush1.bf16.msra.mxu0 %v1485_v19  ;;  %v1544_v15 = vcombine.high %v815_v10, %v819_v12  ;;  %v1489_v19 = vcombine.low %v760_v16, %v764_v17  ;;  %v792_v10 = vld [vmem:[#allocation7 + $0x110] sm:$0xff]  ;;  %v793_v12 = vld [vmem:[#allocation7 + $0x118] sm:$0xff] }
  0x7b   :  { %1226 = vmatpush1.bf16.msra.mxu1 %v1487_v24  ;;  %1186 = vmatprep.subr.bf16.mxu0 %v1494_v26  ;;  %v1492_v24 = vcombine.high %v761_v18, %v765_v21  ;;  %v800_v18 = vld [vmem:[#allocation7 + $0x150] sm:$0xff]  ;;  %v805_v21 = vld [vmem:[#allocation7 + $0x178] sm:$0xff] }
  0x7c   :  { %1227 = vmatprep.subr.bf16.mxu1 %v1496_v30  ;;  %1216 = vmatprep.mubr.bf16.mxu0 %v1851_v22 }
  0x7d   :  { %1257 = vmatprep.mubr.bf16.mxu1 %v1851_v22 }
  0x7e   :  { %1187 = vmatpush1.bf16.msra.mxu0 %v1493_v34 }
  0x7f   :  { %1228 = vmatpush1.bf16.msra.mxu1 %v1495_v35  ;;  %1188 = vmatprep.subr.bf16.mxu0 %v1502_v36 }
  0x80   :  { %1229 = vmatprep.subr.bf16.mxu1 %v1504_v37 }
  0x82   :  { %1189 = vmatpush1.bf16.msra.mxu0 %v1501_v42 }
  0x83   :  { %1230 = vmatpush1.bf16.msra.mxu1 %v1503_v43  ;;  %1190 = vmatprep.subr.bf16.mxu0 %v1510_v44 }
  0x84   :  { %1231 = vmatprep.subr.bf16.mxu1 %v1512_v45 }
  0x86   :  { %1191 = vmatpush1.bf16.msra.mxu0 %v1509_v50  ;;  %v768_v50 = vld [vmem:[#allocation7 + $0x50] sm:$0xff] }
  0x87   :  { %1232 = vmatpush1.bf16.msra.mxu1 %v1511_v51  ;;  %1192 = vmatprep.subr.bf16.mxu0 %v1518_v52  ;;  %v772_v51 = vld [vmem:[#allocation7 + $0x70] sm:$0xff]  ;;  %v769_v52 = vld [vmem:[#allocation7 + $0x58] sm:$0xff] }
  0x88   :  { %1233 = vmatprep.subr.bf16.mxu1 %v1520_v53  ;;  %v773_v53 = vld [vmem:[#allocation7 + $0x78] sm:$0xff]  ;;  %v1498_v56 = vcombine.high %v768_v50, %v772_v51 }
  0x89   :  { %v1500_v57 = vcombine.high %v769_v52, %v773_v53 }
  0x8a   :  { %1193 = vmatpush1.bf16.msra.mxu0 %v1517_v58  ;;  %v776_v58 = vld [vmem:[#allocation7 + $0x90] sm:$0xff] }
  0x8b   :  { %1234 = vmatpush1.bf16.msra.mxu1 %v1519_v59  ;;  %1194 = vmatprep.subr.bf16.mxu0 %v1526_v60  ;;  %v780_v59 = vld [vmem:[#allocation7 + $0xb0] sm:$0xff]  ;;  %v777_v60 = vld [vmem:[#allocation7 + $0x98] sm:$0xff] }
  0x8c   :  { %1235 = vmatprep.subr.bf16.mxu1 %v1528_v61  ;;  %v781_v61 = vld [vmem:[#allocation7 + $0xb8] sm:$0xff]  ;;  %v1506_v0 = vcombine.high %v776_v58, %v780_v59 }
  0x8d   :  { %v1508_v1 = vcombine.high %v777_v60, %v781_v61 }
  0x8e   :  { %1195 = vmatpush1.bf16.msra.mxu0 %v1525_v62  ;;  %v1497_v62 = vcombine.low %v768_v50, %v772_v51 }
  0x8f   :  { %1236 = vmatpush1.bf16.msra.mxu1 %v1527_v63  ;;  %1196 = vmatprep.subr.bf16.mxu0 %v1534_v3  ;;  %v1499_v63 = vcombine.low %v769_v52, %v773_v53  ;;  %v788_v3 = vld [vmem:[#allocation7 + $0xf0] sm:$0xff] }
  0x90   :  { %1237 = vmatprep.subr.bf16.mxu1 %v1536_v7  ;;  %v1507_v7 = vcombine.low %v777_v60, %v781_v61  ;;  %v1514_v8 = vcombine.high %v784_v2, %v788_v3 }
  0x92   :  { %1197 = vmatpush1.bf16.msra.mxu0 %v1533_v5  ;;  %v789_v5 = vld [vmem:[#allocation7 + $0xf8] sm:$0xff] }
  0x93   :  { %1238 = vmatpush1.bf16.msra.mxu1 %v1535_v6  ;;  %1198 = vmatprep.subr.bf16.mxu0 %v1542_v11  ;;  %v1505_v6 = vcombine.low %v776_v58, %v780_v59  ;;  %v1516_v9 = vcombine.high %v785_v4, %v789_v5  ;;  %v796_v11 = vld [vmem:[#allocation7 + $0x130] sm:$0xff] }
  0x94   :  { %1239 = vmatprep.subr.bf16.mxu1 %v1544_v15  ;;  %v1515_v15 = vcombine.low %v785_v4, %v789_v5  ;;  %v1522_v16 = vcombine.high %v792_v10, %v796_v11 }
  0x96   :  { %1199 = vmatpush1.bf16.msra.mxu0 %v1541_v13  ;;  %v797_v13 = vld [vmem:[#allocation7 + $0x138] sm:$0xff] }
  0x97   :  { %1240 = vmatpush1.bf16.msra.mxu1 %v1543_v14  ;;  %1266 = vmatprep.subr.bf16.mxu0 %v1490_v20  ;;  %v1513_v14 = vcombine.low %v784_v2, %v788_v3  ;;  %v1524_v17 = vcombine.high %v793_v12, %v797_v13  ;;  %v801_v20 = vld [vmem:[#allocation7 + $0x158] sm:$0xff] }
  0x98   :  { %1307 = vmatprep.subr.bf16.mxu1 %v1492_v24 }
 0x12c   :  { %v1573_v25 = vpop.f32.mrb[0].mxu0 }
 0x12d   :  { %v1595_v26 = vpop.f32.mrb[0].mxu1  ;;  %v1574_v28 = vpop.f32.mrb[1].mxu0 }
 0x12e   :  { %v1596_v29 = vpop.f32.mrb[1].mxu1  ;;  %v1575_v30 = vadd.f32 %v1574_v28, %v1573_v25  ;;  %v1576_v32 = vpop.f32.mrb[2].mxu0  ;;  %v1532_v25 = vcombine.high %v801_v20, %v805_v21  ;;  %v809_v28 = vld [vmem:[#allocation7 + $0x198] sm:$0xff] }
 0x12f   :  { %v1597_v31 = vadd.f32 %v1596_v29, %v1595_v26  ;;  %v1598_v33 = vpop.f32.mrb[2].mxu1  ;;  %v1577_v34 = vpop.f32.mrb[3].mxu0  ;;  %v808_v26 = vld [vmem:[#allocation7 + $0x190] sm:$0xff]  ;;  %v813_v29 = vld [vmem:[#allocation7 + $0x1b8] sm:$0xff] }
 0x130   :  { %v1599_v35 = vpop.f32.mrb[3].mxu1  ;;  %v631_v36 = vadd.f32 %v1575_v30, %v1420_v27  ;;  %v812_v27 = vld [vmem:[#allocation7 + $0x1b0] sm:$0xff]  ;;  %v1540_v33 = vcombine.high %v809_v28, %v813_v29 }
 0x131   :  { %v1538_v32 = vcombine.high %v808_v26, %v812_v27  ;;  %v816_v34 = vld [vmem:[#allocation7 + $0x1d0] sm:$0xff] }
 0x132   :  { %v671_v37 = vadd.f32 %v1597_v31, %v631_v36  ;;  %v1531_v31 = vcombine.low %v801_v20, %v805_v21  ;;  %v820_v35 = vld [vmem:[#allocation7 + $0x1f0] sm:$0xff]  ;;  %v817_v36 = vld [vmem:[#allocation7 + $0x1d8] sm:$0xff] }
 0x14c   :  { %v1617_v38 = vpop.f32.mrb[4].mxu0 }
 0x14d   :  { %v1639_v39 = vpop.f32.mrb[4].mxu1  ;;  %v1618_v40 = vpop.f32.mrb[5].mxu0 }
 0x14e   :  { %v1619_v41 = vadd.f32 %v1618_v40, %v1617_v38  ;;  %v1640_v42 = vpop.f32.mrb[5].mxu1  ;;  %v1620_v43 = vpop.f32.mrb[6].mxu0  ;;  %v1537_v38 = vcombine.low %v808_v26, %v812_v27  ;;  %v1546_v40 = vcombine.high %v816_v34, %v820_v35 }
 0x14f   :  { %v1641_v44 = vadd.f32 %v1640_v42, %v1639_v39  ;;  %v1642_v45 = vpop.f32.mrb[6].mxu1  ;;  %v1621_v46 = vpop.f32.mrb[7].mxu0  ;;  %v1539_v39 = vcombine.low %v809_v28, %v813_v29  ;;  %v1545_v42 = vcombine.low %v816_v34, %v820_v35 }
 0x150   :  { %v711_v47 = vadd.f32 %v1619_v41, %v671_v37  ;;  %v1643_v48 = vpop.f32.mrb[7].mxu1  ;;  %v821_v37 = vld [vmem:[#allocation7 + $0x1f8] sm:$0xff] }
 0x151   :  { %v1548_v41 = vcombine.high %v817_v36, %v821_v37  ;;  %v1547_v43 = vcombine.low %v817_v36, %v821_v37  ;;  %v822_v48 = vld [vmem:[%s1947_s4] sm:$0xff]  ;;  %s1852_s4 = smov [#allocation8]  }
 0x152   :  { %v751_v49 = vadd.f32 %v1641_v44, %v711_v47  ;;  %v824_v44 = vlaneseq  ;;  %s1410_s8 = sshll.u32 %s1852_s4, 4  ;;  %s1411_s8 = int_to_ptr.vmem [resolvable:$true] %s1410_s8 }
 0x153   :  { %s1816_s9 = scalar_lea.vmem %s1411_s8, 1024  ;;  %p1821_p11 = scmp.lt.s32.totalorder %s1411_s8, %s1411_s8 }
 0x154   :  { %v756_v54 = vmax.f32 %v751_v49, 0.0  ;;  %v825_v45 = vshrl.u32 %v824_v44, 7  ;;  %p1817_p10 = scmp.ne.s32.totalorder %s1411_s8, %s1816_s9  ;;  %p1822_p12 = scmp.lt.s32.totalorder %s1816_s9, %s1816_s9 }
 0x156   :  { %v1922_v55 = vpack.c.bf16 %v756_v54, %v756_v54  ;;  %v826_v46 = vsub.s32 0, %v825_v45  ;;  %v834_v47 = vsub.s32 2, %v825_v45  ;;  %v830_v49 = vsub.s32 1, %v825_v45  ;;  %p1823_p13 = por %p1822_p12, %p1821_p11 }
 0x157   :  { %v838_v50 = vsub.s32 3, %v825_v45 }
 0x158   :  { %1217 = vmatmul.mubr.bf16.vlgmr.msra.gmra.mrb[8].mxu0 %v1922_v55  ;;  %1258 = vmatmul.mubr.bf16.vlgmr.msra.gmra.mrb[8].mxu1 %v1922_v55  ;;  %v827_v51 = vrot.slane %v822_v48, %v826_v46  ;;  %v835_v52 = vrot.slane %v822_v48, %v834_v47  ;;  %v831_v53 = vrot.slane %v822_v48, %v830_v49  ;;  %p1824_p0 = pnand %p1823_p13, %p1817_p10 }
 0x159   :  { %1267 = vmatpush1.bf16.msra.mxu0 %v1489_v19  ;;  %1308 = vmatpush1.bf16.msra.mxu1 %v1491_v23  ;;  %v804_v19 = vld [vmem:[#allocation7 + $0x170] sm:$0xff]  ;;  %v1523_v23 = vcombine.low %v793_v12, %v797_v13  ;;  %v839_v54 = vrot.slane %v822_v48, %v838_v50 }
 0x15a   :  { %1268 = vmatprep.subr.bf16.mxu0 %v1498_v56  ;;  %1309 = vmatprep.subr.bf16.mxu1 %v1500_v57  ;;  %v1530_v24 = vcombine.high %v800_v18, %v804_v19  ;;  %v1529_v30 = vcombine.low %v800_v18, %v804_v19  ;;  %v854_v18 = vsub.s32 7, %v825_v45 }
 0x15b   :  { %1298 = vmatprep.mubr.bf16.mxu0 %v1851_v22  ;;  %1339 = vmatprep.mubr.bf16.mxu1 %v1851_v22  ;;  %v1521_v22 = vcombine.low %v792_v10, %v796_v11 }
 0x15d   :  { %1269 = vmatpush1.bf16.msra.mxu0 %v1497_v62  ;;  %1310 = vmatpush1.bf16.msra.mxu1 %v1499_v63 }
 0x15e   :  { %1270 = vmatprep.subr.bf16.mxu0 %v1506_v0  ;;  %1311 = vmatprep.subr.bf16.mxu1 %v1508_v1 }
 0x161   :  { %1271 = vmatpush1.bf16.msra.mxu0 %v1505_v6  ;;  %1312 = vmatpush1.bf16.msra.mxu1 %v1507_v7 }
 0x162   :  { %1272 = vmatprep.subr.bf16.mxu0 %v1514_v8  ;;  %1313 = vmatprep.subr.bf16.mxu1 %v1516_v9 }
 0x165   :  { %1273 = vmatpush1.bf16.msra.mxu0 %v1513_v14  ;;  %1314 = vmatpush1.bf16.msra.mxu1 %v1515_v15  ;;  %v842_v15 = vsub.s32 4, %v825_v45 }
 0x166   :  { %1274 = vmatprep.subr.bf16.mxu0 %v1522_v16  ;;  %1315 = vmatprep.subr.bf16.mxu1 %v1524_v17  ;;  %v850_v16 = vsub.s32 6, %v825_v45  ;;  %v846_v17 = vsub.s32 5, %v825_v45 }
 0x167   :  { %v843_v21 = vrot.slane %v822_v48, %v842_v15 }
 0x169   :  { %1275 = vmatpush1.bf16.msra.mxu0 %v1521_v22  ;;  %1316 = vmatpush1.bf16.msra.mxu1 %v1523_v23  ;;  %v851_v22 = vrot.slane %v822_v48, %v850_v16 }
 0x16a   :  { %1276 = vmatprep.subr.bf16.mxu0 %v1530_v24  ;;  %1317 = vmatprep.subr.bf16.mxu1 %v1532_v25  ;;  %v847_v24 = vrot.slane %v822_v48, %v846_v17  ;;  %v855_v25 = vrot.slane %v822_v48, %v854_v18 }
 0x16d   :  { %1277 = vmatpush1.bf16.msra.mxu0 %v1529_v30  ;;  %1318 = vmatpush1.bf16.msra.mxu1 %v1531_v31 }
 0x16e   :  { %1278 = vmatprep.subr.bf16.mxu0 %v1538_v32  ;;  %1319 = vmatprep.subr.bf16.mxu1 %v1540_v33 }
 0x171   :  { %1279 = vmatpush1.bf16.msra.mxu0 %v1537_v38  ;;  %1320 = vmatpush1.bf16.msra.mxu1 %v1539_v39 }
 0x172   :  { %1280 = vmatprep.subr.bf16.mxu0 %v1546_v40  ;;  %1321 = vmatprep.subr.bf16.mxu1 %v1548_v41 }
 0x175   :  { %1281 = vmatpush1.bf16.msra.mxu0 %v1545_v42  ;;  %1322 = vmatpush1.bf16.msra.mxu1 %v1547_v43 }
 0x178   :  { %1299 = vmatmul.mubr.bf16.vlgmr.msra.gmra.mrb[12].mxu0 %v1922_v55  ;;  %1340 = vmatmul.mubr.bf16.vlgmr.msra.gmra.mrb[12].mxu1 %v1922_v55 }
 0x22b   :  { %v1218_v56 = vpop.f32.mrb[8].mxu0  ;;  %v1259_v57 = vpop.f32.mrb[8].mxu1 }
 0x22c   :  { %v1219_v58 = vadd.f32 %v1218_v56, %v827_v51  ;;  %v1260_v59 = vadd.f32 %v1259_v57, %v835_v52  ;;  %v1220_v60 = vpop.f32.mrb[9].mxu0  ;;  %v1261_v55 = vpop.f32.mrb[9].mxu1 }
 0x22d   :  { %v1221_v61 = vadd.f32 %v1220_v60, %v831_v53  ;;  %v1262_v62 = vadd.f32 %v1261_v55, %v839_v54  ;;  %v1222_v63 = vpop.f32.mrb[10].mxu0  ;;  %v1263_v0 = vpop.f32.mrb[10].mxu1 }
 0x22e   :  { %v1549_v1 = vmul.f32 -1.442695, %v1219_v58  ;;  %v1551_v2 = vmul.f32 -1.442695, %v1260_v59  ;;  %v1223_v3 = vpop.f32.mrb[11].mxu0  ;;  %v1264_v4 = vpop.f32.mrb[11].mxu1 }
 0x22f   :  { %v1550_v5 = vmul.f32 -1.442695, %v1221_v61  ;;  %v1552_v6 = vmul.f32 -1.442695, %v1262_v62 }
 0x230   :  { %1718 = vpow2.f32 %v1549_v1 }
 0x231   :  { %1720 = vpow2.f32 %v1551_v2 }
 0x232   :  { %1722 = vpow2.f32 %v1550_v5 }
 0x233   :  { %1724 = vpow2.f32 %v1552_v6 }
 0x23a   :  { %v1719_v7 = vpop.eup %1718 }
 0x23b   :  { %v1721_v8 = vpop.eup %1720  ;;  %v1372_v9 = vadd.f32 1.0, %v1719_v7 }
 0x23c   :  { %v1723_v10 = vpop.eup %1722  ;;  %v1374_v11 = vadd.f32 1.0, %v1721_v8 }
 0x23d   :  { %v1725_v12 = vpop.eup %1724  ;;  %1726 = vrcp.f32 %v1372_v9  ;;  %v1373_v13 = vadd.f32 1.0, %v1723_v10 }
 0x23e   :  { %1728 = vrcp.f32 %v1374_v11  ;;  %v1375_v14 = vadd.f32 1.0, %v1725_v12 }
 0x23f   :  { %1730 = vrcp.f32 %v1373_v13 }
 0x240   :  { %1732 = vrcp.f32 %v1375_v14 }
 0x247   :  { %v1727_v19 = vpop.eup %1726 }
 0x248   :  { %v1729_v20 = vpop.eup %1728  ;;  %1396 = vst [vmem:[#allocation8] sm:$0xff] %v1727_v19 }
 0x249   :  { %v1731_v23 = vpop.eup %1730  ;;  %1398 = vst [vmem:[#allocation8 + $0x10] sm:$0xff] %v1729_v20 }
 0x24a   :  { %v1733_v26 = vpop.eup %1732  ;;  %1397 = vst [vmem:[#allocation8 + $0x8] sm:$0xff] %v1731_v23 }
 0x24b   :  { %1399 = vst [vmem:[#allocation8 + $0x18] sm:$0xff] %v1733_v26  ;;  %v1300_v27 = vpop.f32.mrb[12].mxu0  ;;  %v1341_v28 = vpop.f32.mrb[12].mxu1 }
 0x24c   :  { %v1301_v29 = vadd.f32 %v1300_v27, %v843_v21  ;;  %v1342_v30 = vadd.f32 %v1341_v28, %v851_v22  ;;  %v1302_v31 = vpop.f32.mrb[13].mxu0  ;;  %v1343_v32 = vpop.f32.mrb[13].mxu1 }
 0x24d   :  { %v1303_v33 = vadd.f32 %v1302_v31, %v847_v24  ;;  %v1344_v34 = vadd.f32 %v1343_v32, %v855_v25  ;;  %v1304_v35 = vpop.f32.mrb[14].mxu0  ;;  %v1345_v36 = vpop.f32.mrb[14].mxu1 }
 0x24e   :  { %v1553_v37 = vmul.f32 -1.442695, %v1301_v29  ;;  %v1555_v38 = vmul.f32 -1.442695, %v1342_v30  ;;  %v1305_v39 = vpop.f32.mrb[15].mxu0  ;;  %v1346_v40 = vpop.f32.mrb[15].mxu1 }
 0x24f   :  { %v1554_v41 = vmul.f32 -1.442695, %v1303_v33  ;;  %v1556_v42 = vmul.f32 -1.442695, %v1344_v34 }
 0x250   :  { %1734 = vpow2.f32 %v1553_v37 }
 0x251   :  { %1736 = vpow2.f32 %v1555_v38 }
 0x252   :  { %1738 = vpow2.f32 %v1554_v41 }
 0x253   :  { %1740 = vpow2.f32 %v1556_v42 }
 0x25a   :  { %v1735_v43 = vpop.eup %1734 }
 0x25b   :  { %v1737_v44 = vpop.eup %1736  ;;  %v1376_v45 = vadd.f32 1.0, %v1735_v43 }
 0x25c   :  { %v1739_v46 = vpop.eup %1738  ;;  %v1378_v47 = vadd.f32 1.0, %v1737_v44 }
 0x25d   :  { %v1741_v48 = vpop.eup %1740  ;;  %1742 = vrcp.f32 %v1376_v45  ;;  %v1377_v49 = vadd.f32 1.0, %v1739_v46 }
 0x25e   :  { %1744 = vrcp.f32 %v1378_v47  ;;  %v1379_v50 = vadd.f32 1.0, %v1741_v48 }
 0x25f   :  { %1746 = vrcp.f32 %v1377_v49 }
 0x260   :  { %1748 = vrcp.f32 %v1379_v50 }
 0x267   :  { %v1743_v51 = vpop.eup %1742 }
 0x268   :  { %v1745_v52 = vpop.eup %1744  ;;  %1400 = vst [vmem:[#allocation8 + $0x20] sm:$0xff] %v1743_v51 }
 0x269   :  { %v1747_v53 = vpop.eup %1746  ;;  %1402 = vst [vmem:[#allocation8 + $0x30] sm:$0xff] %v1745_v52 }
 0x26a   :  { %v1749_v54 = vpop.eup %1748  ;;  %1401 = vst [vmem:[#allocation8 + $0x28] sm:$0xff] %v1747_v53 }
 0x26b   :  { %1403 = vst [vmem:[#allocation8 + $0x38] sm:$0xff] %v1749_v54 }
 0x26c   :  { %1827 = shalt.err (!%p1824_p0)
}
 0x26d   :  { %s1828_s12 = scalar_lea.hbm %s1948_s5, 1024 }
 0x26e   :  { %p1829_p1 = scmp.ne.s32.totalorder %s1948_s5, %s1828_s12  ;;  %p1832_p2 = scmp.lt.u32.totalorder %s1828_s12, %s1948_s5 }
 0x270   :  { %p1834_p3 = pnand %p1832_p2, %p1829_p1 }
 0x272   :  { %1837 = shalt.err (!%p1834_p3)
}
 0x273   :  { %1413 = dma.vmem_to_hbm [thread:$0]  %s1411_s8, 1024, %s1948_s5, [#allocation4]  }
 0x274   :  { %1842 = dma.done.wait [#allocation4], 1024  }
 0x275   :  { %1843 = vsyncadd [#allocation4], 4294966272 }
 0x276   :  { %1417 = vsyncpa [#allocation3], 1 }
 0x277   :  { %1418 = vsyncpa [#allocation6], 1 }
 0x278   :  { %1419 = vsyncpa [#allocation4], 1 }

</bundles_post_ra>
